<compile_context>
chip_gen: v7x
topology: tpu7x:2x2x1
jax: 0.10.0
libtpu: 0.0.40
codegen_flags: <defaults>
</compile_context>

<pallas_src>
import jax
import jax.numpy as jnp
from jax.experimental import pallas as pl
from jax.experimental.pallas import tpu as pltpu  # noqa: F401  (TPU backend)


BN_EPS = 1e-5


def linear_bn_relu_kernel(x_ref, wt_ref, gb_ref, o_ref):
    # ---- Linear (MXU). wt is (F_in, F_out): K on sublanes, N lane-dense. ----
    # Bias omitted: cancelled exactly by the BN mean subtraction (training mode).
    y = jnp.dot(x_ref[...], wt_ref[...], preferred_element_type=jnp.float32)  # (N, F_out)

    # ---- BatchNorm1d, training-mode batch stats, single pass over y ----
    n = y.shape[0]
    inv_n = 1.0 / n
    s = jnp.sum(y, axis=0, keepdims=True)              # (1, F_out)
    sq = jnp.sum(y * y, axis=0, keepdims=True)         # (1, F_out)
    mean = s * inv_n
    var = jnp.maximum(sq * inv_n - mean * mean, 0.0)   # biased var, clamped >= 0

    # gamma/beta arrive fused as one (2, F_out) block; slice the two rows.
    gb = gb_ref[...]
    gamma = gb[0:1, :]                                  # (1, F_out)
    beta = gb[1:2, :]                                   # (1, F_out)

    # Fold gamma/beta/mean/var into one per-feature scale + shift.
    scale = gamma * jax.lax.rsqrt(var + BN_EPS)         # EUP rsqrt: free slot
    shift = beta - mean * scale

    # ---- Normalize + affine + ReLU (3 VPU ops per element) ----
    o_ref[...] = jnp.maximum(y * scale + shift, 0.0).astype(o_ref.dtype)


def prepare_params(weight, bias, gamma, beta):
    """One-time parameter prep (outside the per-call hot path).

    weight: (F_out, F_in) PyTorch nn.Linear layout  -> returned as (F_in, F_out)
            MXU-native layout.
    bias:   accepted for module parity but unused — exactly removed by the BN
            mean subtraction in training-mode forward.
    gamma/beta: (F_out,) BN affine params -> fused into a single (2, F_out)
            array so the kernel takes one parameter DMA instead of two.
    """
    del bias  # mathematically redundant under training-mode BatchNorm
    w_t = jnp.asarray(weight).T                         # (F_in, F_out)
    gb = jnp.stack([jnp.asarray(gamma), jnp.asarray(beta)], axis=0)  # (2, F_out)
    return w_t, gb


def linear_block(x, w_t, gb):
    """Fused Linear -> BatchNorm1d(train) -> ReLU on pre-prepared params.

    x:   (N, F_in) float32
    w_t: (F_in, F_out) float32  (pre-transposed, MXU-native)
    gb:  (2, F_out) float32     (row 0 = gamma, row 1 = beta)
    """
    n, f_in = x.shape
    f_out = w_t.shape[1]

    return pl.pallas_call(
        linear_bn_relu_kernel,
        out_shape=jax.ShapeDtypeStruct((n, f_out), jnp.float32),
        in_specs=[
            pl.BlockSpec((n, f_in), lambda: (0, 0)),
            pl.BlockSpec((f_in, f_out), lambda: (0, 0)),
            pl.BlockSpec((2, f_out), lambda: (0, 0)),
        ],
        out_specs=pl.BlockSpec((n, f_out), lambda: (0, 0)),
    )(x, w_t, gb)


def reference(x, weight, bias, gamma, beta):
    # Full PyTorch-equivalent math, INCLUDING the Linear bias, to demonstrate
    # that dropping it inside the kernel is exact (up to f32 rounding).
    y = x @ weight.T + bias
    mean = jnp.mean(y, axis=0, keepdims=True)
    var = jnp.mean((y - mean) ** 2, axis=0, keepdims=True)
    y = (y - mean) / jnp.sqrt(var + BN_EPS) * gamma + beta
    return jnp.maximum(y, 0.0)


if __name__ == "__main__":
    # Shapes consistent with LinearBlock(in_features=32, out_features=128).
    N, F_IN, F_OUT = 8, 32, 128

    key = jax.random.PRNGKey(0)
    kx, kw, kb = jax.random.split(key, 3)

    x = jax.random.normal(kx, (N, F_IN), dtype=jnp.float32)

    # PyTorch-style init: W, b ~ U(-1/sqrt(fan_in), 1/sqrt(fan_in)); BN gamma=1, beta=0.
    bound = 1.0 / jnp.sqrt(F_IN)
    weight = jax.random.uniform(kw, (F_OUT, F_IN), minval=-bound, maxval=bound,
                                dtype=jnp.float32)
    bias = jax.random.uniform(kb, (F_OUT,), minval=-bound, maxval=bound,
                              dtype=jnp.float32)
    gamma = jnp.ones((F_OUT,), dtype=jnp.float32)
    beta = jnp.zeros((F_OUT,), dtype=jnp.float32)

    # One-time parameter prep (transpose + gamma/beta fuse) — not per call.
    w_t, gb = prepare_params(weight, bias, gamma, beta)

    out = linear_block(x, w_t, gb)
    out = jax.block_until_ready(out)

    ref = reference(x, weight, bias, gamma, beta)
    assert out.shape == (N, F_OUT)
    assert jnp.allclose(out, ref, atol=1e-4, rtol=1e-4), "mismatch vs reference"

    print("KERNEL_OK")
</pallas_src>

<mosaic_0001>
module attributes {stable_mosaic.version = 11 : i64} {
  func.func @linear_bn_relu_kernel(%arg0: memref<8x32xf32, #tpu.memory_space<vmem>>, %arg1: memref<32x128xf32, #tpu.memory_space<vmem>>, %arg2: memref<2x128xf32, #tpu.memory_space<vmem>>, %arg3: memref<8x128xf32, #tpu.memory_space<vmem>>) attributes {dimension_semantics = [], scalar_prefetch = 0 : i64, scratch_operands = 0 : i64, tpu.core_type = #tpu.core_type<tc>} {
    %c0 = arith.constant 0 : index
    %c0_0 = arith.constant 0 : index
    %0 = vector.load %arg0[%c0, %c0_0] : memref<8x32xf32, #tpu.memory_space<vmem>>, vector<8x32xf32>
    %c0_1 = arith.constant 0 : index
    %c0_2 = arith.constant 0 : index
    %1 = vector.load %arg1[%c0_1, %c0_2] : memref<32x128xf32, #tpu.memory_space<vmem>>, vector<32x128xf32>
    %cst = arith.constant dense<0.000000e+00> : vector<8x128xf32>
    %2 = tpu.matmul %0, %1, %cst {dimension_numbers = #tpu.dot_dimension_numbers<[1], [0], [0], [1], [0, 0, 1, 1], [], []>} : vector<8x32xf32>, vector<32x128xf32>, vector<8x128xf32> -> vector<8x128xf32>
    %cst_3 = arith.constant dense<0.000000e+00> : vector<128xf32>
    %3 = vector.multi_reduction <add>, %2, %cst_3 [0] : vector<8x128xf32> to vector<128xf32>
    %4 = vector.shape_cast %3 : vector<128xf32> to vector<1x128xf32>
    %5 = arith.mulf %2, %2 : vector<8x128xf32>
    %cst_4 = arith.constant dense<0.000000e+00> : vector<128xf32>
    %6 = vector.multi_reduction <add>, %5, %cst_4 [0] : vector<8x128xf32> to vector<128xf32>
    %7 = vector.shape_cast %6 : vector<128xf32> to vector<1x128xf32>
    %cst_5 = arith.constant 1.250000e-01 : f32
    %8 = vector.broadcast %cst_5 : f32 to vector<1x128xf32>
    %9 = arith.mulf %4, %8 : vector<1x128xf32>
    %cst_6 = arith.constant 1.250000e-01 : f32
    %10 = vector.broadcast %cst_6 : f32 to vector<1x128xf32>
    %11 = arith.mulf %7, %10 : vector<1x128xf32>
    %12 = arith.mulf %9, %9 : vector<1x128xf32>
    %13 = arith.subf %11, %12 : vector<1x128xf32>
    %cst_7 = arith.constant 0.000000e+00 : f32
    %14 = vector.broadcast %cst_7 : f32 to vector<1x128xf32>
    %15 = arith.maximumf %13, %14 : vector<1x128xf32>
    %c0_8 = arith.constant 0 : index
    %c0_9 = arith.constant 0 : index
    %16 = vector.load %arg2[%c0_8, %c0_9] : memref<2x128xf32, #tpu.memory_space<vmem>>, vector<2x128xf32>
    %17 = vector.extract_strided_slice %16 {offsets = [0, 0], sizes = [1, 128], strides = [1, 1]} : vector<2x128xf32> to vector<1x128xf32>
    %18 = vector.extract_strided_slice %16 {offsets = [1, 0], sizes = [1, 128], strides = [1, 1]} : vector<2x128xf32> to vector<1x128xf32>
    %cst_10 = arith.constant 9.99999974E-6 : f32
    %19 = vector.broadcast %cst_10 : f32 to vector<1x128xf32>
    %20 = arith.addf %15, %19 : vector<1x128xf32>
    %21 = math.rsqrt %20 : vector<1x128xf32>
    %22 = arith.mulf %17, %21 : vector<1x128xf32>
    %23 = arith.mulf %9, %22 : vector<1x128xf32>
    %24 = arith.subf %18, %23 : vector<1x128xf32>
    %25 = vector.broadcast %22 : vector<1x128xf32> to vector<8x128xf32>
    %26 = arith.mulf %2, %25 : vector<8x128xf32>
    %27 = vector.broadcast %24 : vector<1x128xf32> to vector<8x128xf32>
    %28 = arith.addf %26, %27 : vector<8x128xf32>
    %cst_11 = arith.constant 0.000000e+00 : f32
    %29 = vector.broadcast %cst_11 : f32 to vector<8x128xf32>
    %30 = arith.maximumf %28, %29 : vector<8x128xf32>
    %c0_12 = arith.constant 0 : index
    %c0_13 = arith.constant 0 : index
    %31 = vector.load %arg3[%c0_12, %c0_13] : memref<8x128xf32, #tpu.memory_space<vmem>>, vector<8x128xf32>
    tpu.vector_store %arg3[%c0_12, %c0_13], %30 {strides = array<i32>} : memref<8x128xf32, #tpu.memory_space<vmem>>, vector<8x128xf32>,
    return
  }
}

</mosaic_0001>

<bundles_post_ra>
// kernel: tpu_custom_call.1
= control target key start
LH: loop header
LB: loop body
LE: loop exit
PB: predicated region body
PF: predicated region fallthrough
CT: control target
= control target key end

     0   :  { %8 = vsyncpa [#allocation3], 0  ;;  %s354_s0 = inlined_call_operand.hbm [shape: f32[8,32], index: 0, kind: input, shape index: {}]   ;;  %s355_s1 = inlined_call_operand.hbm [shape: f32[32,128], index: 1, kind: input, shape index: {}]   ;;  %s356_s2 = inlined_call_operand.vmem [shape: f32[2,128], index: 2, kind: input, shape index: {}]   ;;  %s357_s3 = inlined_call_operand.hbm [shape: f32[8,128], index: 3, kind: output, shape index: {}]  }
   0x1   :  { %9 = vsyncpa [#allocation6], 0 }
   0x2   :  { %10 = vsyncpa [#allocation4], 0  ;;  %s280_s12 = smov [#allocation2]   ;;  %s281_s14 = smov [#allocation5]  }
   0x3   :  { %s17_s13 = sshll.u32 %s280_s12, 4  ;;  %s26_s15 = sshll.u32 %s281_s14, 4  ;;  %s18_s13 = int_to_ptr.vmem [resolvable:$true] %s17_s13  ;;  %s308_s15 = int_to_ptr.vmem [resolvable:$true] %s26_s15 }
   0x4   :  { %s208_s18 = scalar_lea.hbm %s354_s0, 128 }
   0x5   :  { %p209_p0 = scmp.ne.s32.totalorder %s354_s0, %s208_s18  ;;  %p212_p1 = scmp.lt.u32.totalorder %s208_s18, %s354_s0 }
   0x7   :  { %p214_p2 = pnand %p212_p1, %p209_p0 }
   0x9   :  { %217 = shalt.err (!%p214_p2)
}
   0xa   :  { %s218_s23 = scalar_lea.vmem %s18_s13, 128  ;;  %p223_p4 = scmp.lt.s32.totalorder %s18_s13, %s18_s13 }
   0xb   :  { %p219_p3 = scmp.ne.s32.totalorder %s18_s13, %s218_s23  ;;  %p224_p5 = scmp.lt.s32.totalorder %s218_s23, %s218_s23 }
   0xd   :  { %p225_p6 = por %p224_p5, %p223_p4 }
   0xf   :  { %p226_p7 = pnand %p225_p6, %p219_p3 }
  0x11   :  { %229 = shalt.err (!%p226_p7)
}
  0x12   :  { %20 = dma.hbm_to_vmem [thread:$0]  %s354_s0, 128, %s18_s13, [#allocation3]  }
  0x13   :  { %s230_s28 = scalar_lea.hbm %s355_s1, 512 }
  0x14   :  { %p231_p8 = scmp.ne.s32.totalorder %s355_s1, %s230_s28  ;;  %p234_p9 = scmp.lt.u32.totalorder %s230_s28, %s355_s1 }
  0x16   :  { %p236_p10 = pnand %p234_p9, %p231_p8 }
  0x18   :  { %239 = shalt.err (!%p236_p10)
}
  0x19   :  { %s240_s6 = scalar_lea.vmem %s308_s15, 512  ;;  %p245_p12 = scmp.lt.s32.totalorder %s308_s15, %s308_s15 }
  0x1a   :  { %p241_p11 = scmp.ne.s32.totalorder %s308_s15, %s240_s6  ;;  %p246_p13 = scmp.lt.s32.totalorder %s240_s6, %s240_s6 }
  0x1c   :  { %p247_p0 = por %p246_p13, %p245_p12 }
  0x1e   :  { %p248_p1 = pnand %p247_p0, %p241_p11 }
  0x20   :  { %251 = shalt.err (!%p248_p1)
}
  0x21   :  { %s282_s0 = smov 128   ;;  %s283_s7 = smov 8  }
  0x22   :  { %32 = dma.hbm_to_vmem [thread:$0]  %s355_s1, 512, %s308_s15, [#allocation6], %s282_s0, %s282_s0, %s283_s7  }
  0x23   :  { %274 = dma.done.wait [#allocation3], 128  }
  0x24   :  { %275 = vsyncadd [#allocation3], 4294967168 }
  0x25   :  { %276 = dma.done.wait [#allocation6], 512  }
  0x26   :  { %277 = vsyncadd [#allocation6], 4294966784  ;;  %v284_v0 = vmov 0.0|0.0   ;;  %vm285_vm0 = vmmov 0   ;;  %v286_v1 = vmov 0.0   ;;  %v42_v2 = vld [vmem:[#allocation5] sm:$0xff]  ;;  %v147_v30 = vlaneseq }
  0x27   :  { %192 = vmatprep.subr.bf16.mxu0 %v284_v0  ;;  %189 = vmatprep.mubr.msk.f32.mxu0 %vm285_vm0, %v286_v1  ;;  %v43_v3 = vld [vmem:[#allocation5 + $0x8] sm:$0xff]  ;;  %v44_v4 = vld [vmem:[#allocation5 + $0x10] sm:$0xff]  ;;  %v45_v6 = vld [vmem:[#allocation5 + $0x18] sm:$0xff]  ;;  %vm46_vm1 = vcmask 261120   ;;  %s287_s11 = smov [#allocation7]  }
  0x28   :  { %v193_v5 = vpack.c.bf16 %v43_v3, %v42_v2  ;;  %v196_v7 = vpack.c.bf16 %v45_v6, %v44_v4  ;;  %v41_v8 = vld [vmem:[#allocation2] sm:$0xff]  ;;  %v148_v31 = vshrl.u32 %v147_v30, 7  ;;  %s165_s12 = sshll.u32 %s287_s11, 4  ;;  %s166_s12 = int_to_ptr.vmem [resolvable:$true] %s165_s12 }
  0x29   :  { %v138_v32 = vld [vmem:[%s356_s2] sm:$0x3]  ;;  %s252_s13 = scalar_lea.vmem %s166_s12, 128  ;;  %p257_p3 = scmp.lt.s32.totalorder %s166_s12, %s166_s12 }
  0x2a   :  { %194 = vmatpush3.bf16.msra.mxu0 %v193_v5  ;;  %v149_v35 = vsub.s32 0, %v148_v31  ;;  %v154_v39 = vsub.s32 1, %v148_v31  ;;  %p253_p2 = scmp.ne.s32.totalorder %s166_s12, %s252_s13  ;;  %p258_p4 = scmp.lt.s32.totalorder %s252_s13, %s252_s13 }
  0x2b   :  { %195 = vmatprep.subr.bf16.mxu0 %v284_v0 }
  0x2c   :  { %p259_p5 = por %p258_p4, %p257_p3 }
  0x2e   :  { %197 = vmatpush3.bf16.msra.mxu0 %v196_v7  ;;  %p260_p6 = pnand %p259_p5, %p253_p2 }
  0x31   :  { %190 = vmatmul.mubr.msk.f32.vlgmr.msra.gmra.mrb[0].mxu0 %vm46_vm1, %v41_v8 }
 0x104   :  { %v116_v9 = vpop.f32.mrb[0].mxu0 }
 0x105   :  { %v120_v10 = vrot.slane %v116_v9, 4  ;;  %v126_v11 = vmul.f32 %v116_v9, %v116_v9  ;;  %v191_v12 = vpop.f32.mrb[1].mxu0 }
 0x107   :  { %v121_v13 = vadd.f32 %v120_v10, %v116_v9  ;;  %v127_v14 = vrot.slane %v126_v11, 4 }
 0x109   :  { %v122_v15 = vrot.slane %v121_v13, 2  ;;  %v128_v16 = vadd.f32 %v127_v14, %v126_v11 }
 0x10b   :  { %v123_v17 = vadd.f32 %v122_v15, %v121_v13  ;;  %v129_v18 = vrot.slane %v128_v16, 2 }
 0x10d   :  { %v124_v19 = vrot.slane %v123_v17, 1  ;;  %v130_v20 = vadd.f32 %v129_v18, %v128_v16 }
 0x10f   :  { %v125_v21 = vadd.f32 %v124_v19, %v123_v17  ;;  %v131_v22 = vrot.slane %v130_v20, 1 }
 0x111   :  { %v132_v23 = vadd.f32 %v131_v22, %v130_v20  ;;  %v133_v24 = vmul.f32 0.125, %v125_v21 }
 0x113   :  { %v134_v25 = vmul.f32 0.125, %v132_v23  ;;  %v135_v26 = vmul.f32 %v133_v24, %v133_v24 }
 0x115   :  { %v136_v27 = vsub.f32 %v134_v25, %v135_v26 }
 0x117   :  { %v137_v28 = vmax.f32 %v136_v27, 0.0 }
 0x119   :  { %v139_v29 = vadd.f32 1e-05, %v137_v28 }
 0x11b   :  { %206 = vrsqrt.f32 %v139_v29 }
 0x125   :  { %v207_v33 = vpop.eup %206 }
 0x126   :  { %v141_v34 = vmul.f32 %v207_v33, %v138_v32 }
 0x128   :  { %v142_v36 = vmul.f32 %v141_v34, %v133_v24  ;;  %v150_v37 = vrot.slane %v141_v34, %v149_v35 }
 0x12a   :  { %v144_v38 = vrot.slane %v142_v36, 7  ;;  %v151_v41 = vmul.f32 %v150_v37, %v116_v9 }
 0x12c   :  { %v146_v40 = vsub.f32 %v138_v32, %v144_v38 }
 0x12e   :  { %v155_v42 = vrot.slane %v146_v40, %v154_v39 }
 0x130   :  { %v156_v43 = vadd.f32 %v155_v42, %v151_v41 }
 0x132   :  { %v157_v44 = vmax.f32 %v156_v43, 0.0 }
 0x134   :  { %158 = vst [vmem:[#allocation7] sm:$0xff] %v157_v44 }
 0x135   :  { %263 = shalt.err (!%p260_p6)
}
 0x136   :  { %s264_s15 = scalar_lea.hbm %s357_s3, 128 }
 0x137   :  { %p265_p7 = scmp.ne.s32.totalorder %s357_s3, %s264_s15  ;;  %p268_p8 = scmp.lt.u32.totalorder %s264_s15, %s357_s3 }
 0x139   :  { %p270_p9 = pnand %p268_p8, %p265_p7 }
 0x13b   :  { %273 = shalt.err (!%p270_p9)
}
 0x13c   :  { %168 = dma.vmem_to_hbm [thread:$0]  %s166_s12, 128, %s357_s3, [#allocation4]  }
 0x13d   :  { %278 = dma.done.wait [#allocation4], 128  }
 0x13e   :  { %279 = vsyncadd [#allocation4], 4294967168 }
 0x13f   :  { %172 = vsyncpa [#allocation3], 1 }
 0x140   :  { %173 = vsyncpa [#allocation6], 1 }
 0x141   :  { %174 = vsyncpa [#allocation4], 1 }

</bundles_post_ra>
